<compile_context>
chip_gen: v6e
topology: v6e:2x2x1
jax: 0.10.0
libtpu: 0.0.40
codegen_flags: <defaults>
</compile_context>

<pallas_src>
import math
import jax
import jax.numpy as jnp
from jax.experimental import pallas as pl
from jax.experimental.pallas import tpu as pltpu


def _round_up(x, m):
    return ((x + m - 1) // m) * m


def _decoder_kernel(z_ref, w1_ref, b1_ref, w2_ref, b2_ref, o_ref):
    # fc1 on the MXU: (tm, E) @ (E, H), f32 accumulation.
    h = jnp.dot(z_ref[...], w1_ref[...], preferred_element_type=jnp.float32)
    # bias + LeakyReLU(0.1) in f32 on the VPU.
    h = h + b1_ref[...]
    h = jnp.where(h > 0, h, 0.1 * h)
    # dropout: eval-mode identity.
    # TODO(synk): training-mode dropout (pltpu.prng_random_bits mask scaled by 1/(1-p)).
    # fc2 on the MXU: (tm, H) @ (H, F_pad), f32 accumulation.
    out = jnp.dot(h.astype(w2_ref.dtype), w2_ref[...],
                  preferred_element_type=jnp.float32)
    out = out + b2_ref[...]
    o_ref[...] = out.astype(o_ref.dtype)


def feature_decoder(z, w1, b1, w2, b2, *, tile_m=512, compute_dtype=jnp.bfloat16):
    """z: (B, S, E) or (N, E). w1: (E, H), w2: (H, F). Returns (..., F)."""
    orig_shape = z.shape
    E = orig_shape[-1]
    z2 = z.reshape(-1, E)
    N = z2.shape[0]
    H = w1.shape[1]
    F = w2.shape[1]
    out_dtype = z.dtype

    # ---- lane-dense output: pad num_features up to a multiple of 128 --------
    F_pad = max(128, _round_up(F, 128))
    w2_p = jnp.zeros((H, F_pad), compute_dtype).at[:, :F].set(w2.astype(compute_dtype))
    b2_p = jnp.zeros((1, F_pad), jnp.float32).at[:, :F].set(
        b2.astype(jnp.float32).reshape(1, F))

    # bf16 activations/weights (halves HBM traffic on z, the dominant bytes);
    # biases kept in f32 for the f32 elementwise path.
    z2c = z2.astype(compute_dtype)
    w1c = w1.astype(compute_dtype)
    b1_2d = b1.astype(jnp.float32).reshape(1, H)

    # ---- row tiling ----------------------------------------------------------
    # Large tiles amortize the ~0.35 us/step overhead; cap at the (8-rounded)
    # row count for small inputs.
    tm = int(min(tile_m, _round_up(max(N, 1), 8)))
    tm = max(tm, 8)
    # Give v7x's two TensorCores at least 2 parallel grid steps when the row
    # count supports a reasonable (>=128-row) tile per core.
    if N >= 256 and N <= tm:
        tm = _round_up(pl.cdiv(N, 2), 8)
    N_pad = _round_up(N, tm)
    if N_pad != N:
        z2c = jnp.pad(z2c, ((0, N_pad - N), (0, 0)))
    grid = (N_pad // tm,)

    # ---- VMEM budget (sized against v7x's 64 MiB physical VMEM) -------------
    it_c = jnp.dtype(compute_dtype).itemsize
    it_o = jnp.dtype(out_dtype).itemsize
    est = 2 * tm * E * it_c + 2 * tm * F_pad * it_o          # pipelined z / out tiles
    est += 2 * (E * H + H * F_pad) * it_c + 2 * (H + F_pad) * 4  # resident params
    est += tm * (H + F_pad) * 4                              # f32 intermediates
    vmem_limit = int(min(max(2 * est, 8 * 1024 * 1024), 48 * 1024 * 1024))

    out = pl.pallas_call(
        _decoder_kernel,
        out_shape=jax.ShapeDtypeStruct((N_pad, F_pad), out_dtype),
        grid_spec=pltpu.PrefetchScalarGridSpec(
            num_scalar_prefetch=0,
            grid=grid,
            in_specs=[
                pl.BlockSpec((tm, E), lambda i: (i, 0)),      # z rows (streamed)
                pl.BlockSpec((E, H), lambda i: (0, 0)),       # fc1 weight (resident)
                pl.BlockSpec((1, H), lambda i: (0, 0)),       # fc1 bias   (resident)
                pl.BlockSpec((H, F_pad), lambda i: (0, 0)),   # fc2 weight (resident, lane-padded)
                pl.BlockSpec((1, F_pad), lambda i: (0, 0)),   # fc2 bias   (resident, lane-padded)
            ],
            out_specs=pl.BlockSpec((tm, F_pad), lambda i: (i, 0)),
        ),
        compiler_params=pltpu.CompilerParams(
            dimension_semantics=("parallel",),
            vmem_limit_bytes=vmem_limit,
        ),
    )(z2c, w1c, b1_2d, w2_p, b2_p)

    return out[:N, :F].reshape(*orig_shape[:-1], F)


def _xavier_uniform(key, fan_in, fan_out, dtype=jnp.float32):
    # matches nn.init.xavier_uniform_ for a (fan_out, fan_in) PyTorch weight;
    # sampled directly in (fan_in, fan_out) layout (same distribution).
    limit = math.sqrt(6.0 / (fan_in + fan_out))
    return jax.random.uniform(key, (fan_in, fan_out), dtype, -limit, limit)


if __name__ == "__main__":
    # small shapes consistent with the module
    batch, seq = 2, 8
    embed_dim = 32
    num_features = 4
    hidden = embed_dim // 2

    key = jax.random.PRNGKey(0)
    k_z, k_w1, k_w2 = jax.random.split(key, 3)

    z = jax.random.normal(k_z, (batch, seq, embed_dim), dtype=jnp.float32)

    # deterministic parameter init (Xavier-uniform weights, zero biases)
    w1 = _xavier_uniform(k_w1, embed_dim, hidden)          # (E, H)
    b1 = jnp.zeros((hidden,), dtype=jnp.float32)
    w2 = _xavier_uniform(k_w2, hidden, num_features)       # (H, F)
    b2 = jnp.zeros((num_features,), dtype=jnp.float32)

    out = feature_decoder(z, w1, b1, w2, b2)
    out = jax.block_until_ready(out)

    # reference in plain JAX with the same bf16-input / f32-accumulate recipe
    # (eval-mode dropout = identity)
    zb = z.reshape(-1, embed_dim).astype(jnp.bfloat16)
    h_ref = jnp.dot(zb, w1.astype(jnp.bfloat16),
                    preferred_element_type=jnp.float32) + b1
    h_ref = jnp.where(h_ref > 0, h_ref, 0.1 * h_ref)
    ref = jnp.dot(h_ref.astype(jnp.bfloat16), w2.astype(jnp.bfloat16),
                  preferred_element_type=jnp.float32) + b2
    ref = ref.reshape(batch, seq, num_features)

    assert out.shape == (batch, seq, num_features)
    assert jnp.allclose(out, ref, atol=1e-2, rtol=1e-2), (
        float(jnp.max(jnp.abs(out - ref))))

    print("KERNEL_OK")
</pallas_src>

<mosaic_0001>
module attributes {stable_mosaic.version = 11 : i64} {
  func.func @_decoder_kernel(%arg0: i32, %arg1: memref<16x32xbf16, #tpu.memory_space<vmem>>, %arg2: memref<32x16xbf16, #tpu.memory_space<vmem>>, %arg3: memref<1x16xf32, #tpu.memory_space<vmem>>, %arg4: memref<16x128xbf16, #tpu.memory_space<vmem>>, %arg5: memref<1x128xf32, #tpu.memory_space<vmem>>, %arg6: memref<16x128xf32, #tpu.memory_space<vmem>>) attributes {dimension_semantics = [#tpu.dimension_semantics<parallel>], iteration_bounds = array<i64: 1>, scalar_prefetch = 0 : i64, scratch_operands = 0 : i64, tpu.core_type = #tpu.core_type<tc>, window_params = [{transform_indices = @transform_0, window_bounds = array<i64: 16, 32>}, {pipeline_mode = #tpu.pipeline_mode<synchronous>, transform_indices = @transform_1, window_bounds = array<i64: 32, 16>}, {pipeline_mode = #tpu.pipeline_mode<synchronous>, transform_indices = @transform_2, window_bounds = array<i64: 1, 16>}, {pipeline_mode = #tpu.pipeline_mode<synchronous>, transform_indices = @transform_3, window_bounds = array<i64: 16, 128>}, {pipeline_mode = #tpu.pipeline_mode<synchronous>, transform_indices = @transform_4, window_bounds = array<i64: 1, 128>}, {transform_indices = @transform_5, window_bounds = array<i64: 16, 128>}]} {
    %c0 = arith.constant 0 : index
    %c0_0 = arith.constant 0 : index
    %0 = vector.load %arg1[%c0, %c0_0] : memref<16x32xbf16, #tpu.memory_space<vmem>>, vector<16x32xbf16>
    %c0_1 = arith.constant 0 : index
    %c0_2 = arith.constant 0 : index
    %1 = vector.load %arg2[%c0_1, %c0_2] : memref<32x16xbf16, #tpu.memory_space<vmem>>, vector<32x16xbf16>
    %cst = arith.constant dense<0.000000e+00> : vector<16x16xf32>
    %2 = tpu.matmul %0, %1, %cst {dimension_numbers = #tpu.dot_dimension_numbers<[1], [0], [0], [1], [0, 0, 1, 1], [], []>} : vector<16x32xbf16>, vector<32x16xbf16>, vector<16x16xf32> -> vector<16x16xf32>
    %c0_3 = arith.constant 0 : index
    %c0_4 = arith.constant 0 : index
    %3 = vector.load %arg3[%c0_3, %c0_4] : memref<1x16xf32, #tpu.memory_space<vmem>>, vector<1x16xf32>
    %4 = vector.broadcast %3 : vector<1x16xf32> to vector<16x16xf32>
    %5 = arith.addf %2, %4 : vector<16x16xf32>
    %cst_5 = arith.constant 0.000000e+00 : f32
    %6 = vector.broadcast %cst_5 : f32 to vector<16x16xf32>
    %7 = arith.cmpf ogt, %5, %6 : vector<16x16xf32>
    %cst_6 = arith.constant 1.000000e-01 : f32
    %8 = vector.broadcast %cst_6 : f32 to vector<16x16xf32>
    %9 = arith.mulf %8, %5 : vector<16x16xf32>
    %10 = arith.select %7, %5, %9 : vector<16x16xi1>, vector<16x16xf32>
    %11 = arith.truncf %10 : vector<16x16xf32> to vector<16x16xbf16>
    %c0_7 = arith.constant 0 : index
    %c0_8 = arith.constant 0 : index
    %12 = vector.load %arg4[%c0_7, %c0_8] : memref<16x128xbf16, #tpu.memory_space<vmem>>, vector<16x128xbf16>
    %cst_9 = arith.constant dense<0.000000e+00> : vector<16x128xf32>
    %13 = tpu.matmul %11, %12, %cst_9 {dimension_numbers = #tpu.dot_dimension_numbers<[1], [0], [0], [1], [0, 0, 1, 1], [], []>} : vector<16x16xbf16>, vector<16x128xbf16>, vector<16x128xf32> -> vector<16x128xf32>
    %c0_10 = arith.constant 0 : index
    %c0_11 = arith.constant 0 : index
    %14 = vector.load %arg5[%c0_10, %c0_11] : memref<1x128xf32, #tpu.memory_space<vmem>>, vector<1x128xf32>
    %15 = vector.broadcast %14 : vector<1x128xf32> to vector<16x128xf32>
    %16 = arith.addf %13, %15 : vector<16x128xf32>
    %c0_12 = arith.constant 0 : index
    %c0_13 = arith.constant 0 : index
    %17 = vector.load %arg6[%c0_12, %c0_13] : memref<16x128xf32, #tpu.memory_space<vmem>>, vector<16x128xf32>
    tpu.vector_store %arg6[%c0_12, %c0_13], %16 {strides = array<i32>} : memref<16x128xf32, #tpu.memory_space<vmem>>, vector<16x128xf32>,
    return
  }
  func.func @transform_0(%arg0: i32) -> (i32, i32) {
    %c0_i32 = arith.constant 0 : i32
    %c0_i32_0 = arith.constant 0 : i32
    return %arg0, %c0_i32 : i32, i32
  }
  func.func @transform_1(%arg0: i32) -> (i32, i32) {
    %c0_i32 = arith.constant 0 : i32
    %c0_i32_0 = arith.constant 0 : i32
    %c0_i32_1 = arith.constant 0 : i32
    return %c0_i32, %c0_i32_0 : i32, i32
  }
  func.func @transform_2(%arg0: i32) -> (i32, i32) {
    %c0_i32 = arith.constant 0 : i32
    %c0_i32_0 = arith.constant 0 : i32
    %c0_i32_1 = arith.constant 0 : i32
    return %c0_i32, %c0_i32_0 : i32, i32
  }
  func.func @transform_3(%arg0: i32) -> (i32, i32) {
    %c0_i32 = arith.constant 0 : i32
    %c0_i32_0 = arith.constant 0 : i32
    %c0_i32_1 = arith.constant 0 : i32
    return %c0_i32, %c0_i32_0 : i32, i32
  }
  func.func @transform_4(%arg0: i32) -> (i32, i32) {
    %c0_i32 = arith.constant 0 : i32
    %c0_i32_0 = arith.constant 0 : i32
    %c0_i32_1 = arith.constant 0 : i32
    return %c0_i32, %c0_i32_0 : i32, i32
  }
  func.func @transform_5(%arg0: i32) -> (i32, i32) {
    %c0_i32 = arith.constant 0 : i32
    %c0_i32_0 = arith.constant 0 : i32
    return %arg0, %c0_i32 : i32, i32
  }
}

</mosaic_0001>

<bundles_post_ra>
// kernel: tpu_custom_call.1
= control target key start
LH: loop header
LB: loop body
LE: loop exit
PB: predicated region body
PF: predicated region fallthrough
CT: control target
= control target key end

     0   :  { %v240_v1 = vmov 0.0   ;;  %vm241_vm0 = vmmov 0   ;;  %s296_s0 = inlined_call_operand.vmem [shape: bf16[16,32], index: 0, kind: input, shape index: {}]   ;;  %s297_s1 = inlined_call_operand.vmem [shape: bf16[32,16], index: 1, kind: input, shape index: {}]   ;;  %s298_s2 = inlined_call_operand.vmem [shape: f32[1,16], index: 2, kind: input, shape index: {}]   ;;  %s299_s3 = inlined_call_operand.vmem [shape: bf16[16,128], index: 3, kind: input, shape index: {}]   ;;  %s300_s4 = inlined_call_operand.vmem [shape: f32[1,128], index: 4, kind: input, shape index: {}]   ;;  %s301_s5 = inlined_call_operand.hbm [shape: f32[16,128], index: 5, kind: output, shape index: {}]  }
   0x1   :  { %v214_v0 = vld [vmem:[%s297_s1 + $0x8] sm:$0xff]   ;;  %195 = vmatprep.subr.bf16.mxu0 %v240_v1  ;;  %203 = vmatprep.subr.bf16.mxu1 %v240_v1  ;;  %v215_v2 = vld [vmem:[%s297_s1] sm:$0xff]  }
   0x2   :  { %196 = vmatpush3.bf16.msra.mxu0 %v214_v0  ;;  %199 = vmatprep.mubr.msk.bf16.mxu0 %vm241_vm0, %v240_v1 }
   0x3   :  { %197 = vmatprep.subr.bf16.mxu0 %v240_v1  ;;  %205 = vmatprep.mubr.msk.bf16.mxu1 %vm241_vm0, %v240_v1 }
   0x4   :  { %10 = vsyncpa [#allocation3], 0  ;;  %v216_v3 = vld [vmem:[%s296_s0] sm:$0xff]   ;;  %vm52_vm1 = vcmask 261120   ;;  %vm119_vm4 = vcmask 130048  }
   0x5   :  { %v217_v4 = vld [vmem:[%s299_s3] sm:$0xff]  }
   0x6   :  { %198 = vmatpush3.bf16.msra.mxu0 %v215_v2  ;;  %204 = vmatpush3.bf16.msra.mxu1 %v217_v4  ;;  %v182_v5 = vld [vmem:[%s298_s2] ss:$0 sm:$0xff]  ;;  %s242_s2 = smov [#allocation2]  }
   0x7   :  { %v187_v17 = vld [vmem:[%s300_s4] ss:$0 sm:$0xff]  ;;  %s171_s3 = sshll.u32 %s242_s2, 4  ;;  %s172_s3 = int_to_ptr.vmem [resolvable:$true] %s171_s3 }
   0x8   :  { %s218_s28 = scalar_lea.vmem %s172_s3, 256  ;;  %p223_p1 = scmp.lt.s32.totalorder %s172_s3, %s172_s3 }
   0x9   :  { %200 = vmatmul.mubr.msk.bf16.vlgmr.msra.gmra.mxu0 %vm52_vm1, %v216_v3  ;;  %p219_p0 = scmp.ne.s32.totalorder %s172_s3, %s218_s28  ;;  %p224_p2 = scmp.lt.s32.totalorder %s218_s28, %s218_s28 }
   0xb   :  { %p225_p3 = por %p224_p2, %p223_p1 }
   0xd   :  { %p226_p4 = pnand %p225_p3, %p219_p0 }
  0xc9   :  { %v90_v6 = vpop.f32.mrf.mxu0 }
  0xca   :  { %v91_v7 = vadd.f32 %v182_v5, %v90_v6 }
  0xcb   :  { %v201_v8 = vpop.f32.mrf.mxu0 }
  0xcc   :  { %v99_v10 = vmul.f32 0.1, %v91_v7  ;;  %vm97_vm2 = vcmp.gt.f32.partialorder %v91_v7, 0.0 }
  0xcd   :  { %v93_v9 = vpop.f32.mrf.mxu0 }
  0xce   :  { %v94_v11 = vadd.f32 %v182_v5, %v93_v9  ;;  %v101_v14 = vsel %vm97_vm2, %v91_v7, %v99_v10 }
  0xcf   :  { %v202_v12 = vpop.f32.mrf.mxu0 }
  0xd0   :  { %vm98_vm3 = vcmp.gt.f32.partialorder %v94_v11, 0.0  ;;  %v100_v13 = vmul.f32 0.1, %v94_v11 }
  0xd2   :  { %v102_v15 = vsel %vm98_vm3, %v94_v11, %v100_v13 }
  0xd3   :  { %v103_v16 = vpack.c.bf16 %v102_v15, %v101_v14 }
  0xd5   :  { %206 = vmatmul.mubr.msk.bf16.vlgmr.msra.gmra.mxu1 %vm119_vm4, %v103_v16 }
 0x195   :  { %v157_v18 = vpop.f32.mrf.mxu1 }
 0x196   :  { %v158_v19 = vadd.f32 %v187_v17, %v157_v18 }
 0x197   :  { %v207_v20 = vpop.f32.mrf.mxu1 }
 0x198   :  { %164 = vst [vmem:[#allocation2] sm:$0xff] %v158_v19 }
 0x199   :  { %v160_v21 = vpop.f32.mrf.mxu1 }
 0x19a   :  { %v161_v22 = vadd.f32 %v187_v17, %v160_v21 }
 0x19b   :  { %v208_v23 = vpop.f32.mrf.mxu1 }
 0x19c   :  { %165 = vst [vmem:[#allocation2 + $0x8] sm:$0xff] %v161_v22 }
 0x19d   :  { %229 = shalt.err (!%p226_p4)
}
 0x19e   :  { %s243_s29 = smov 128   ;;  %s244_s4 = smov 8  }
 0x19f   :  { %177 = dma.vmem_to_hbm [thread:$0]  %s172_s3, 256, %s301_s5, [#allocation3], %s243_s29, %s243_s29, %s244_s4  }
 0x1a0   :  { %238 = dma.done.wait [#allocation3], 256  }
 0x1a1   :  { %239 = vsyncadd [#allocation3], 4294967040 }
 0x1a2   :  { %181 = vsyncpa [#allocation3], 1 }

</bundles_post_ra>
